<compile_context>
chip_gen: v5e
topology: v5e:2x2
jax: 0.10.0
libtpu: 0.0.40
codegen_flags: <defaults>
</compile_context>

<pallas_src>
import functools

import jax
import jax.numpy as jnp
import numpy as np
from jax.experimental import pallas as pl
from jax.experimental.pallas import tpu as pltpu

EPS = 1e-6


def _round_up(n, m):
    return ((n + m - 1) // m) * m


def sublayer_connection_kernel(seed_ref, x_ref, w_ref, p_ref, o_ref, *,
                               dropout_p, train, tm, d):
    """One (tm, D) row tile: LayerNorm -> dense (MXU) -> dropout -> residual."""
    x = x_ref[...].astype(jnp.float32)                        # (tm, D)

    gamma = p_ref[0:1, :]                                     # (1, D)
    beta = p_ref[1:2, :]                                      # (1, D)
    bias = p_ref[2:3, :]                                      # (1, D)

    # --- LayerNorm (PyTorch semantics: unbiased std, eps added to std) -----
    mean = jnp.mean(x, axis=-1, keepdims=True)                # (tm, 1)
    centered = x - mean
    var_unbiased = jnp.sum(centered * centered, axis=-1, keepdims=True) * (
        1.0 / (d - 1))
    # 1/(std + eps): sqrt exact, reciprocal on the EUP (approx) — (tm,1) only.
    inv = pl.reciprocal(jnp.sqrt(var_unbiased) + EPS, approx=True)
    normed = gamma * (centered * inv) + beta

    # --- Sublayer: dense size->size projection on the MXU ------------------
    # bf16 inputs, f32 accumulation => native MXU throughput.
    sub = jnp.dot(normed.astype(jnp.bfloat16), w_ref[...],
                  preferred_element_type=jnp.float32) + bias

    # --- Dropout (training): stateless counter-hash PRNG, uint threshold ---
    if train and dropout_p > 0.0:
        row = jax.lax.broadcasted_iota(jnp.int32, (tm, d), 0).astype(jnp.uint32)
        col = jax.lax.broadcasted_iota(jnp.int32, (tm, d), 1).astype(jnp.uint32)
        gid = pl.program_id(0).astype(jnp.uint32)
        seed = seed_ref[0].astype(jnp.uint32)
        ctr = (gid * jnp.uint32(tm) + row) * jnp.uint32(d) + col
        h = ctr ^ (seed * jnp.uint32(0x9E3779B9))
        # splitmix32-style mix — pure VPU integer ops, no TPU-only primitives.
        h = h ^ (h >> 16)
        h = h * jnp.uint32(0x7FEB352D)
        h = h ^ (h >> 15)
        h = h * jnp.uint32(0x846CA68B)
        h = h ^ (h >> 16)
        thr = jnp.uint32(min(int(round(dropout_p * 4294967296.0)), 0xFFFFFFFF))
        keep = h >= thr                                       # P(keep) = 1 - p
        scale = jnp.float32(1.0 / (1.0 - dropout_p))
        sub = sub * jnp.where(keep, scale, jnp.float32(0.0))

    # --- Residual add -------------------------------------------------------
    o_ref[...] = (x + sub).astype(o_ref.dtype)


def sublayer_connection(x, w, b, gamma, beta, seed, *, dropout_p=0.1,
                        train=True, tm=256):
    """x: (B, S, D). Returns x + dropout(LayerNorm(x) @ W + b)."""
    B, S, D = x.shape
    N = B * S
    xf = x.reshape(N, D)

    # Row tile: big enough to keep the MXU fed, never bigger than the
    # (sublane-padded) problem; pad N instead of asserting divisibility.
    tm_eff = max(8, min(_round_up(tm, 8), _round_up(N, 8)))
    n_pad = _round_up(N, tm_eff)
    if n_pad != N:
        xf = jnp.pad(xf, ((0, n_pad - N), (0, 0)))

    # Fuse gamma / beta / bias into a single (3, D) constant-index block.
    params = jnp.concatenate(
        [gamma.reshape(1, D), beta.reshape(1, D), b.reshape(1, D)],
        axis=0).astype(jnp.float32)
    w_bf16 = w.astype(jnp.bfloat16)        # MXU inputs bf16, accumulate in f32

    kernel = functools.partial(sublayer_connection_kernel,
                               dropout_p=float(dropout_p), train=bool(train),
                               tm=tm_eff, d=D)

    cost = pl.CostEstimate(
        flops=2 * n_pad * D * D,
        transcendentals=n_pad,                           # one sqrt per row
        bytes_accessed=2 * n_pad * D * 4 + D * D * 2 + 3 * D * 4,
    )

    out = pl.pallas_call(
        kernel,
        out_shape=jax.ShapeDtypeStruct((n_pad, D), x.dtype),
        grid_spec=pltpu.PrefetchScalarGridSpec(
            num_scalar_prefetch=1,                       # seed -> SMEM
            grid=(n_pad // tm_eff,),
            in_specs=[
                pl.BlockSpec((tm_eff, D), lambda i, seed: (i, 0)),  # x rows
                pl.BlockSpec((D, D), lambda i, seed: (0, 0)),       # W (bf16)
                pl.BlockSpec((3, D), lambda i, seed: (0, 0)),       # g/b/bias
            ],
            out_specs=pl.BlockSpec((tm_eff, D), lambda i, seed: (i, 0)),
        ),
        compiler_params=pltpu.CompilerParams(
            dimension_semantics=("parallel",),   # no carried state per step
            vmem_limit_bytes=48 * 1024 * 1024,
        ),
        cost_estimate=cost,
    )(seed, xf, w_bf16, params)

    return out[:N].reshape(B, S, D)


if __name__ == "__main__":
    B, S, D = 2, 8, 128
    dropout_p = 0.1

    key = jax.random.PRNGKey(0)
    kx, kw = jax.random.split(key)

    x = jax.random.normal(kx, (B, S, D), dtype=jnp.float32)

    # LayerNorm(size): a_2 = ones(size), b_2 = zeros(size).
    gamma = jnp.ones((D,), dtype=jnp.float32)
    beta = jnp.zeros((D,), dtype=jnp.float32)
    # Representative fused sublayer: Linear(size, size).
    w = jax.random.normal(kw, (D, D), dtype=jnp.float32) * (1.0 / jnp.sqrt(D))
    b = jnp.zeros((D,), dtype=jnp.float32)

    seed = jnp.array([0], dtype=jnp.int32)

    # Eval-mode check against a pure-JAX reference (dropout is identity).
    out_eval = sublayer_connection(x, w, b, gamma, beta, seed,
                                   dropout_p=dropout_p, train=False)
    mean = x.mean(-1, keepdims=True)
    std = jnp.std(x, axis=-1, keepdims=True, ddof=1)
    normed = gamma * (x - mean) / (std + EPS) + beta
    ref = x + (normed @ w + b)
    np.testing.assert_allclose(np.asarray(out_eval), np.asarray(ref),
                               atol=5e-2, rtol=5e-2)

    # Training-mode run (dropout active).
    out = sublayer_connection(x, w, b, gamma, beta, seed,
                              dropout_p=dropout_p, train=True)
    jax.block_until_ready(out)
    assert out.shape == (B, S, D)
    assert bool(jnp.isfinite(out).all())
    print("KERNEL_OK")
</pallas_src>

<mosaic_0001>
module attributes {stable_mosaic.version = 11 : i64} {
  func.func @sublayer_connection_kernel(%arg0: i32, %arg1: memref<1xi32, #tpu.memory_space<smem>>, %arg2: memref<16x128xf32, #tpu.memory_space<vmem>>, %arg3: memref<128x128xbf16, #tpu.memory_space<vmem>>, %arg4: memref<3x128xf32, #tpu.memory_space<vmem>>, %arg5: memref<16x128xf32, #tpu.memory_space<vmem>>) attributes {dimension_semantics = [#tpu.dimension_semantics<parallel>], iteration_bounds = array<i64: 1>, scalar_prefetch = 1 : i64, scratch_operands = 0 : i64, tpu.core_type = #tpu.core_type<tc>, window_params = [{transform_indices = @transform_0, window_bounds = array<i64: 16, 128>}, {pipeline_mode = #tpu.pipeline_mode<synchronous>, transform_indices = @transform_1, window_bounds = array<i64: 128, 128>}, {pipeline_mode = #tpu.pipeline_mode<synchronous>, transform_indices = @transform_2, window_bounds = array<i64: 3, 128>}, {transform_indices = @transform_3, window_bounds = array<i64: 16, 128>}]} {
    %c0 = arith.constant 0 : index
    %c0_0 = arith.constant 0 : index
    %0 = vector.load %arg2[%c0, %c0_0] : memref<16x128xf32, #tpu.memory_space<vmem>>, vector<16x128xf32>
    %c0_1 = arith.constant 0 : index
    %c0_2 = arith.constant 0 : index
    %1 = vector.load %arg4[%c0_1, %c0_2] : memref<3x128xf32, #tpu.memory_space<vmem>>, vector<1x128xf32>
    %c1 = arith.constant 1 : index
    %c0_3 = arith.constant 0 : index
    %2 = vector.load %arg4[%c1, %c0_3] : memref<3x128xf32, #tpu.memory_space<vmem>>, vector<1x128xf32>
    %c2 = arith.constant 2 : index
    %c0_4 = arith.constant 0 : index
    %3 = vector.load %arg4[%c2, %c0_4] : memref<3x128xf32, #tpu.memory_space<vmem>>, vector<1x128xf32>
    %cst = arith.constant dense<0.000000e+00> : vector<16xf32>
    %4 = vector.multi_reduction <add>, %0, %cst [1] : vector<16x128xf32> to vector<16xf32>
    %5 = vector.shape_cast %4 : vector<16xf32> to vector<16x1xf32>
    %cst_5 = arith.constant 1.280000e+02 : f32
    %6 = vector.broadcast %cst_5 : f32 to vector<16x1xf32>
    %7 = arith.divf %5, %6 : vector<16x1xf32>
    %8 = vector.broadcast %7 : vector<16x1xf32> to vector<16x128xf32>
    %9 = arith.subf %0, %8 : vector<16x128xf32>
    %10 = arith.mulf %9, %9 : vector<16x128xf32>
    %cst_6 = arith.constant dense<0.000000e+00> : vector<16xf32>
    %11 = vector.multi_reduction <add>, %10, %cst_6 [1] : vector<16x128xf32> to vector<16xf32>
    %12 = vector.shape_cast %11 : vector<16xf32> to vector<16x1xf32>
    %cst_7 = arith.constant 0.00787401571 : f32
    %13 = vector.broadcast %cst_7 : f32 to vector<16x1xf32>
    %14 = arith.mulf %12, %13 : vector<16x1xf32>
    %15 = math.sqrt %14 : vector<16x1xf32>
    %cst_8 = arith.constant 9.99999997E-7 : f32
    %16 = vector.broadcast %cst_8 : f32 to vector<16x1xf32>
    %17 = arith.addf %15, %16 : vector<16x1xf32>
    %18 = tpu.reciprocal %17 {approx = true} : vector<16x1xf32> -> vector<16x1xf32>
    %19 = vector.broadcast %18 : vector<16x1xf32> to vector<16x128xf32>
    %20 = arith.mulf %9, %19 : vector<16x128xf32>
    %21 = vector.broadcast %1 : vector<1x128xf32> to vector<16x128xf32>
    %22 = arith.mulf %21, %20 : vector<16x128xf32>
    %23 = vector.broadcast %2 : vector<1x128xf32> to vector<16x128xf32>
    %24 = arith.addf %22, %23 : vector<16x128xf32>
    %25 = arith.truncf %24 : vector<16x128xf32> to vector<16x128xbf16>
    %c0_9 = arith.constant 0 : index
    %c0_10 = arith.constant 0 : index
    %26 = vector.load %arg3[%c0_9, %c0_10] : memref<128x128xbf16, #tpu.memory_space<vmem>>, vector<128x128xbf16>
    %cst_11 = arith.constant dense<0.000000e+00> : vector<16x128xf32>
    %27 = tpu.matmul %25, %26, %cst_11 {dimension_numbers = #tpu.dot_dimension_numbers<[1], [0], [0], [1], [0, 0, 1, 1], [], []>} : vector<16x128xbf16>, vector<128x128xbf16>, vector<16x128xf32> -> vector<16x128xf32>
    %28 = vector.broadcast %3 : vector<1x128xf32> to vector<16x128xf32>
    %29 = arith.addf %27, %28 : vector<16x128xf32>
    %30 = arith.addf %0, %29 : vector<16x128xf32>
    %c0_12 = arith.constant 0 : index
    %c0_13 = arith.constant 0 : index
    %31 = vector.load %arg5[%c0_12, %c0_13] : memref<16x128xf32, #tpu.memory_space<vmem>>, vector<16x128xf32>
    tpu.vector_store %arg5[%c0_12, %c0_13], %30 {strides = array<i32>} : memref<16x128xf32, #tpu.memory_space<vmem>>, vector<16x128xf32>,
    return
  }
  func.func @transform_0(%arg0: i32, %arg1: memref<1xi32, #tpu.memory_space<smem>>) -> (i32, i32) {
    %c0_i32 = arith.constant 0 : i32
    %c0_i32_0 = arith.constant 0 : i32
    return %arg0, %c0_i32 : i32, i32
  }
  func.func @transform_1(%arg0: i32, %arg1: memref<1xi32, #tpu.memory_space<smem>>) -> (i32, i32) {
    %c0_i32 = arith.constant 0 : i32
    %c0_i32_0 = arith.constant 0 : i32
    %c0_i32_1 = arith.constant 0 : i32
    return %c0_i32, %c0_i32_0 : i32, i32
  }
  func.func @transform_2(%arg0: i32, %arg1: memref<1xi32, #tpu.memory_space<smem>>) -> (i32, i32) {
    %c0_i32 = arith.constant 0 : i32
    %c0_i32_0 = arith.constant 0 : i32
    %c0_i32_1 = arith.constant 0 : i32
    return %c0_i32, %c0_i32_0 : i32, i32
  }
  func.func @transform_3(%arg0: i32, %arg1: memref<1xi32, #tpu.memory_space<smem>>) -> (i32, i32) {
    %c0_i32 = arith.constant 0 : i32
    %c0_i32_0 = arith.constant 0 : i32
    return %arg0, %c0_i32 : i32, i32
  }
}

</mosaic_0001>

<bundles_post_ra>
// kernel: tpu_custom_call.1
= control target key start
LH: loop header
LB: loop body
LE: loop exit
PB: predicated region body
PF: predicated region fallthrough
CT: control target
= control target key end

     0   :  { %10 = vsyncpa [#allocation5], 0  ;;  %s456_s0 = inlined_call_operand.<no memory space> [shape: s32[1], index: 0, kind: input, shape index: {}]   ;;  %s457_s1 = inlined_call_operand.hbm [shape: f32[16,128], index: 1, kind: input, shape index: {}]   ;;  %s458_s2 = inlined_call_operand.hbm [shape: bf16[128,128], index: 2, kind: input, shape index: {}]   ;;  %s459_s3 = inlined_call_operand.hbm [shape: f32[3,128], index: 3, kind: input, shape index: {}]   ;;  %s460_s4 = inlined_call_operand.hbm [shape: f32[16,128], index: 4, kind: output, shape index: {}]  }
   0x1   :  { %11 = vsyncpa [#allocation8], 0  ;;  %s30_s17 = sshll.u32 %s458_s2, 4  ;;  %s31_s17 = int_to_ptr.hbm [resolvable:$true] %s30_s17 }
   0x2   :  { %12 = vsyncpa [#allocation6], 0  ;;  %s394_s0 = smov [#allocation7]   ;;  %s17_s21 = sshll.u32 %s457_s1, 4  ;;  %s18_s21 = int_to_ptr.hbm [resolvable:$true] %s17_s21 }
   0x3   :  { %s32_s18 = sshll.u32 %s394_s0, 4  ;;  %s395_s22 = smov 64   ;;  %s33_s18 = int_to_ptr.vmem [resolvable:$true] %s32_s18 }
   0x4   :  { %s396_s23 = smov 4   ;;  %s397_s24 = smov [#allocation4]  }
   0x5   :  { %38 = dma.hbm_to_vmem [thread:$0]  %s31_s17, 1024, %s33_s18, [#allocation8], %s395_s22, %s395_s22, %s396_s23  }
   0x6   :  { %s19_s25 = sshll.u32 %s397_s24, 4  ;;  %s398_s26 = smov 128   ;;  %s20_s25 = int_to_ptr.vmem [resolvable:$true] %s19_s25 }
   0x7   :  { %s399_s27 = smov 8   ;;  %s44_s29 = sshll.u32 %s459_s3, 4  ;;  %s45_s29 = int_to_ptr.hbm [resolvable:$true] %s44_s29 }
   0x8   :  { %25 = dma.hbm_to_vmem [thread:$0]  %s18_s21, 256, %s20_s25, [#allocation5], %s398_s26, %s398_s26, %s399_s27  }
   0x9   :  { %s400_s30 = smov [#allocation9]  }
   0xa   :  { %s46_s1 = sshll.u32 %s400_s30, 4  ;;  %s47_s1 = int_to_ptr.vmem [resolvable:$true] %s46_s1 }
   0xb   :  { %49 = dma.hbm_to_vmem [thread:$0]  %s45_s29, 64, %s47_s1, [#allocation8]  }
   0xc   :  { %388 = dma.done.wait [#allocation5], 256  }
   0xd   :  { %389 = vsyncadd [#allocation5], 4294967040 }
   0xe   :  { %390 = dma.done.wait [#allocation8], 1088  }
   0xf   :  { %391 = vsyncadd [#allocation8], 4294966208  ;;  %v440_v0 = vld [vmem:[#allocation4] sm:$0xff]  ;;  %v443_v1 = vld [vmem:[#allocation4 + $0x8] sm:$0xff]  ;;  %v401_v2 = vmov 128.0   ;;  %s402_s3 = smov [#allocation10]  }
  0x10   :  { %67 = vadd.xlane.f32.xlu0 %v440_v0  ;;  %282 = vrcp.f32 %v401_v2  ;;  %v269_v17 = vld [vmem:[#allocation7 + $0x38] sm:$0xff]  ;;  %v268_v18 = vld [vmem:[#allocation7 + $0x30] sm:$0xff]  ;;  %v267_v19 = vld [vmem:[#allocation7 + $0x28] sm:$0xff]  ;;  %s214_s5 = sshll.u32 %s402_s3, 4  ;;  %s216_s8 = sshll.u32 %s460_s4, 4  ;;  %s215_s5 = int_to_ptr.vmem [resolvable:$true] %s214_s5  ;;  %s217_s8 = int_to_ptr.hbm [resolvable:$true] %s216_s8 }
  0x11   :  { %192 = vmatpush.bf16.msra.mxu0 %v269_v17  ;;  %v266_v20 = vld [vmem:[#allocation7 + $0x20] sm:$0xff]  ;;  %v265_v21 = vld [vmem:[#allocation7 + $0x18] sm:$0xff]  ;;  %v264_v24 = vld [vmem:[#allocation7 + $0x10] sm:$0xff] }
  0x12   :  { %v263_v25 = vld [vmem:[#allocation7 + $0x8] sm:$0xff]  ;;  %v262_v30 = vld [vmem:[#allocation7] sm:$0xff] }
  0x13   :  { %v279_v53 = vld [vmem:[#allocation9] ss:$0 sm:$0xff]  ;;  %v280_v57 = vld [vmem:[#allocation9 + $0x1] ss:$0 sm:$0xff]  ;;  %v281_v62 = vld [vmem:[#allocation9 + $0x2] ss:$0 sm:$0xff] }
  0x15   :  { %193 = vmatpush.bf16.msra.mxu0 %v268_v18 }
  0x16   :  { %v283_v3 = vpop.eup %282 }
  0x17   :  { %v72_v4 = vmul.f32 128.0, %v283_v3  ;;  %vm76_vm0 = vweird.f32 %v283_v3 }
  0x18   :  { %69 = vadd.xlane.f32.xlu0 %v443_v1 }
  0x19   :  { %v73_v5 = vsub.f32 1.0, %v72_v4  ;;  %194 = vmatpush.bf16.msra.mxu0 %v267_v19 }
  0x1b   :  { %v74_v6 = vmul.f32 %v283_v3, %v73_v5 }
  0x1d   :  { %v75_v7 = vadd.f32 %v283_v3, %v74_v6  ;;  %195 = vmatpush.bf16.msra.mxu0 %v266_v20 }
  0x1f   :  { %v77_v8 = vsel %vm76_vm0, %v283_v3, %v75_v7 }
  0x21   :  { %196 = vmatpush.bf16.msra.mxu0 %v265_v21 }
  0x25   :  { %197 = vmatpush.bf16.msra.mxu0 %v264_v24 }
  0x29   :  { %198 = vmatpush.bf16.msra.mxu0 %v263_v25 }
  0x2d   :  { %199 = vmatpush.bf16.msra.mxu0 %v262_v30 }
  0x83   :  { %v68_v9 = vpop.xlane.xlu0 %67 }
  0x84   :  { %v78_v10 = vmul.f32 %v77_v8, %v68_v9 }
  0x86   :  { %v80_v11 = vsub.f32 %v440_v0, %v78_v10 }
  0x88   :  { %v82_v12 = vmul.f32 %v80_v11, %v80_v11 }
  0x8a   :  { %84 = vadd.xlane.f32.xlu1 %v82_v12 }
  0x8b   :  { %v70_v13 = vpop.xlane.xlu0 %69 }
  0x8c   :  { %v79_v14 = vmul.f32 %v77_v8, %v70_v13 }
  0x8e   :  { %v81_v15 = vsub.f32 %v443_v1, %v79_v14 }
  0x90   :  { %v83_v16 = vmul.f32 %v81_v15, %v81_v15 }
  0x92   :  { %86 = vadd.xlane.f32.xlu1 %v83_v16 }
  0xfd   :  { %v85_v22 = vpop.xlane.xlu1 %84 }
  0xfe   :  { %v88_v23 = vmul.f32 0.007874016, %v85_v22 }
 0x100   :  { %284 = vrsqrt.f32 %v88_v23  ;;  %vm97_vm1 = vcmp.eq.f32.partialorder %v88_v23, inf  ;;  %v100_v39 = vand.u32 2147483648, %v88_v23  ;;  %vm99_vm2 = vcmp.eq.f32.partialorder %v88_v23, 0.0 }
 0x105   :  { %v87_v26 = vpop.xlane.xlu1 %86 }
 0x106   :  { %v285_v27 = vpop.eup %284  ;;  %v89_v28 = vmul.f32 0.007874016, %v87_v26 }
 0x107   :  { %v91_v29 = vmul.f32 %v285_v27, %v88_v23 }
 0x108   :  { %286 = vrsqrt.f32 %v89_v28  ;;  %vm109_vm3 = vcmp.eq.f32.partialorder %v89_v28, inf  ;;  %v112_v47 = vand.u32 2147483648, %v89_v28  ;;  %vm111_vm4 = vcmp.eq.f32.partialorder %v89_v28, 0.0 }
 0x109   :  { %v92_v31 = vmul.f32 %v285_v27, %v91_v29 }
 0x10b   :  { %v93_v32 = vmul.f32 0.5, %v92_v31 }
 0x10d   :  { %v94_v33 = vsub.f32 1.5, %v93_v32 }
 0x10e   :  { %v287_v34 = vpop.eup %286 }
 0x10f   :  { %v103_v35 = vmul.f32 %v287_v34, %v89_v28  ;;  %v95_v36 = vmul.f32 %v285_v27, %v94_v33 }
 0x111   :  { %v104_v37 = vmul.f32 %v287_v34, %v103_v35  ;;  %v96_v38 = vmul.f32 %v95_v36, %v88_v23 }
 0x113   :  { %v98_v40 = vsel %vm97_vm1, %v88_v23, %v96_v38  ;;  %v105_v41 = vmul.f32 0.5, %v104_v37 }
 0x114   :  { %v101_v42 = vsel %vm99_vm2, %v100_v39, %v98_v40 }
 0x115   :  { %v106_v43 = vsub.f32 1.5, %v105_v41  ;;  %v114_v44 = vadd.f32 1e-06, %v101_v42 }
 0x117   :  { %v107_v45 = vmul.f32 %v287_v34, %v106_v43  ;;  %288 = vrcp.f32 %v114_v44 }
 0x119   :  { %v108_v46 = vmul.f32 %v107_v45, %v89_v28 }
 0x11b   :  { %v110_v48 = vsel %vm109_vm3, %v89_v28, %v108_v46 }
 0x11c   :  { %v113_v49 = vsel %vm111_vm4, %v112_v47, %v110_v48 }
 0x11d   :  { %v115_v50 = vadd.f32 1e-06, %v113_v49  ;;  %v289_v51 = vpop.eup %288 }
 0x11e   :  { %v118_v52 = vmul.f32 %v289_v51, %v80_v11 }
 0x11f   :  { %290 = vrcp.f32 %v115_v50 }
 0x120   :  { %v121_v56 = vmul.f32 %v279_v53, %v118_v52 }
 0x122   :  { %v124_v59 = vadd.f32 %v280_v57, %v121_v56 }
 0x125   :  { %v291_v54 = vpop.eup %290 }
 0x126   :  { %v119_v55 = vmul.f32 %v291_v54, %v81_v15 }
 0x128   :  { %v122_v58 = vmul.f32 %v279_v53, %v119_v55 }
 0x12a   :  { %v125_v60 = vadd.f32 %v280_v57, %v122_v58 }
 0x12c   :  { %v126_v61 = vpack.c.bf16 %v125_v60, %v124_v59 }
 0x12e   :  { %200 = vmatmul.bf16.vlgmr.msra.gmra.mxu0 %v126_v61 }
 0x1ab   :  { %v201_v63 = vpop.f32.mrf.mxu0 }
 0x1ac   :  { %v202_v2 = vadd.f32 %v281_v62, %v201_v63 }
 0x1ae   :  { %v206_v3 = vadd.f32 %v202_v2, %v440_v0 }
 0x1b0   :  { %208 = vst [vmem:[#allocation10] sm:$0xff] %v206_v3 }
 0x1b3   :  { %v203_v4 = vpop.f32.mrf.mxu0 }
 0x1b4   :  { %v204_v5 = vadd.f32 %v281_v62, %v203_v4 }
 0x1b6   :  { %v207_v6 = vadd.f32 %v204_v5, %v443_v1 }
 0x1b8   :  { %209 = vst [vmem:[#allocation10 + $0x8] sm:$0xff] %v207_v6 }
 0x1b9   :  { %222 = dma.vmem_to_hbm [thread:$0]  %s215_s5, 256, %s217_s8, [#allocation6], %s398_s26, %s398_s26, %s399_s27  }
 0x1ba   :  { %392 = dma.done.wait [#allocation6], 256  }
 0x1bb   :  { %393 = vsyncadd [#allocation6], 4294967040 }
 0x1bc   :  { %227 = vsyncpa [#allocation5], 1 }
 0x1bd   :  { %228 = vsyncpa [#allocation8], 1 }
 0x1be   :  { %229 = vsyncpa [#allocation6], 1 }

</bundles_post_ra>
